<compile_context>
chip_gen: v7x
topology: tpu7x:2x2x1
jax: 0.10.0
libtpu: 0.0.40
codegen_flags: <defaults>
</compile_context>

<pallas_src>
import functools

import jax
import jax.numpy as jnp
from jax.experimental import pallas as pl
from jax.experimental.pallas import tpu as pltpu


def _round_up(x: int, m: int) -> int:
    return ((x + m - 1) // m) * m


def policy_fc_kernel(obs_ref, w1_ref, b1_ref, w2_ref, b2_ref, out_ref):
    # obs_ref: (TM, K) f32    w1_ref: (K, Hp) bf16   b1_ref: (1, Hp) f32
    # w2_ref:  (Hp, A) bf16   b2_ref: (1, A)  f32    out_ref: (TM, A) f32
    x = obs_ref[...].astype(w1_ref.dtype)                       # bf16 MXU operand
    h = jnp.dot(x, w1_ref[...], preferred_element_type=jnp.float32) + b1_ref[...]
    h = jnp.tanh(h)                                              # f32 tanh (v5e-safe)
    y = jnp.dot(h.astype(w2_ref.dtype), w2_ref[...],
                preferred_element_type=jnp.float32) + b2_ref[...]
    out_ref[...] = y.astype(out_ref.dtype)


def prepare_policy_fc_params(w1, b1, w2, b2, weight_dtype=jnp.bfloat16):
    """Pad + cast parameters ONCE (not per forward call).

    w1: (len_obs, len_hidden)  (= torch l1.weight.T)
    b1: (len_hidden,)
    w2: (len_hidden, len_act)  (= torch l2.weight.T)
    b2: (len_act,)

    Only the hidden dim is padded (to a multiple of 128).  Zero padding is
    exact: tanh(0 + 0) = 0 and the corresponding W2 rows are zero.  The obs
    (K) and action (A) dims are left unpadded — full-dim blocks are legal and
    this keeps HBM traffic minimal.
    """
    len_obs, len_hidden = w1.shape
    len_act = w2.shape[1]
    hp = _round_up(len_hidden, 128)

    w1p = jnp.zeros((len_obs, hp), weight_dtype).at[:, :len_hidden].set(
        w1.astype(weight_dtype))
    b1p = jnp.zeros((1, hp), jnp.float32).at[0, :len_hidden].set(
        b1.astype(jnp.float32))
    w2p = jnp.zeros((hp, len_act), weight_dtype).at[:len_hidden, :].set(
        w2.astype(weight_dtype))
    b2p = b2.astype(jnp.float32).reshape(1, len_act)

    meta = dict(len_obs=len_obs, len_hidden=len_hidden, len_act=len_act, hp=hp)
    return (w1p, b1p, w2p, b2p), meta


@functools.partial(jax.jit, static_argnames=("tm_max",))
def _policy_fc_batched_impl(obs2d, w1p, b1p, w2p, b2p, *, tm_max=512):
    """obs2d: (B, len_obs) f32. Returns (B, len_act) f32."""
    b, k = obs2d.shape
    hp = w1p.shape[1]
    a = w2p.shape[1]

    # --- batch tiling: few big, waste-free tiles; tm always a multiple of 8 ---
    tm_cap = max(8, _round_up(int(tm_max), 8))
    if b >= 16:
        # Guarantee >= 2 grid steps so ("parallel",) can shard across both v7x
        # TensorCores; harmless (sequential loop) on single-TC v5e/v6e.
        tm_cap = min(tm_cap, _round_up(pl.cdiv(b, 2), 8))
    steps = pl.cdiv(b, tm_cap)
    tm = _round_up(pl.cdiv(b, steps), 8)
    b_pad = steps * tm

    # Pad only the batch rows, and only when needed (no full-array zero-fill).
    obs_p = obs2d if b_pad == b else jnp.pad(obs2d, ((0, b_pad - b), (0, 0)))

    cost = pl.CostEstimate(
        flops=2 * b_pad * k * hp + 2 * b_pad * hp * a,
        transcendentals=b_pad * hp,
        bytes_accessed=(4 * b_pad * k            # obs (f32)
                        + 2 * (k * hp + hp * a)  # bf16 weights
                        + 4 * (hp + a)           # f32 biases
                        + 4 * b_pad * a),        # narrow f32 output
    )

    out = pl.pallas_call(
        policy_fc_kernel,
        out_shape=jax.ShapeDtypeStruct((b_pad, a), jnp.float32),
        grid=(steps,),
        in_specs=[
            pl.BlockSpec((tm, k), lambda i: (i, 0)),    # obs tile streams over batch
            pl.BlockSpec((k, hp), lambda i: (0, 0)),    # W1 resident in VMEM
            pl.BlockSpec((1, hp), lambda i: (0, 0)),    # b1 resident
            pl.BlockSpec((hp, a), lambda i: (0, 0)),    # W2 resident
            pl.BlockSpec((1, a), lambda i: (0, 0)),     # b2 resident
        ],
        out_specs=pl.BlockSpec((tm, a), lambda i: (i, 0)),
        compiler_params=pltpu.CompilerParams(
            dimension_semantics=("parallel",)),
        cost_estimate=cost,
    )(obs_p, w1p, b1p, w2p, b2p)

    return out if b_pad == b else out[:b]


def policy_fc_forward_batched(obs_batch, params, meta, *, tm_max=512):
    """Batched forward: obs_batch (B, ...) -> (B, len_act). High-throughput path."""
    w1p, b1p, w2p, b2p = params
    b = obs_batch.shape[0]
    obs2d = obs_batch.reshape(b, -1).astype(jnp.float32)
    assert obs2d.shape[1] == meta["len_obs"]
    return _policy_fc_batched_impl(obs2d, w1p, b1p, w2p, b2p, tm_max=tm_max)


def policy_fc_forward(obs, params, meta):
    """Exact PolicyFC.forward semantics: obs.reshape(1, -1) -> l1 -> tanh -> l2.

    Returns (1, len_act). Internally pads the single row to an 8-row tile
    (extra rows sliced away) and reuses the batched kernel.
    """
    return policy_fc_forward_batched(obs.reshape(1, -1), params, meta)


def init_policy_fc_params(key, len_obs, len_act, len_hidden):
    """Deterministic init mirroring torch.nn.Linear default:
    U(-1/sqrt(fan_in), 1/sqrt(fan_in)) for both weights and biases."""
    k1, k2, k3, k4 = jax.random.split(key, 4)
    bound1 = 1.0 / jnp.sqrt(jnp.float32(len_obs))
    bound2 = 1.0 / jnp.sqrt(jnp.float32(len_hidden))
    # stored already transposed relative to torch: (in, out)
    w1 = jax.random.uniform(k1, (len_obs, len_hidden), jnp.float32, -bound1, bound1)
    b1 = jax.random.uniform(k2, (len_hidden,), jnp.float32, -bound1, bound1)
    w2 = jax.random.uniform(k3, (len_hidden, len_act), jnp.float32, -bound2, bound2)
    b2 = jax.random.uniform(k4, (len_act,), jnp.float32, -bound2, bound2)
    return w1, b1, w2, b2


if __name__ == "__main__":
    # Small shapes consistent with the module: obs of shape (4, 4) -> len_obs=16,
    # hidden=32, 4 actions.
    len_obs, len_act, len_hidden = 16, 4, 32

    key = jax.random.PRNGKey(0)
    pkey, okey, bkey = jax.random.split(key, 3)
    w1, b1, w2, b2 = init_policy_fc_params(pkey, len_obs, len_act, len_hidden)

    # Pad + cast ONCE, outside the hot path (weights are bf16 MXU operands).
    params, meta = prepare_policy_fc_params(w1, b1, w2, b2)

    # Reference matching the kernel's arithmetic (bf16 operands, f32 accumulate).
    w1b = w1.astype(jnp.bfloat16).astype(jnp.float32)
    w2b = w2.astype(jnp.bfloat16).astype(jnp.float32)

    def ref_fn(x2d):
        xq = x2d.astype(jnp.bfloat16).astype(jnp.float32)
        h = jnp.tanh(xq @ w1b + b1[None, :])
        hq = h.astype(jnp.bfloat16).astype(jnp.float32)
        return hq @ w2b + b2[None, :]

    # --- single-observation path (matches PolicyFC.forward exactly) ---
    obs = jax.random.normal(okey, (4, 4), jnp.float32)  # reshaped to (1, 16) inside
    q_vals = jax.block_until_ready(policy_fc_forward(obs, params, meta))
    assert q_vals.shape == (1, len_act)
    assert jnp.allclose(q_vals, ref_fn(obs.reshape(1, -1)), atol=1e-2, rtol=1e-2)
    ref_f32 = jnp.tanh(obs.reshape(1, -1) @ w1 + b1[None, :]) @ w2 + b2[None, :]
    assert jnp.allclose(q_vals, ref_f32, atol=5e-2, rtol=5e-2)

    # --- batched path (the performance lever: many envs / timesteps at once) ---
    obs_batch = jax.random.normal(bkey, (16, 4, 4), jnp.float32)  # 16 envs -> 2-step grid
    q_batch = jax.block_until_ready(policy_fc_forward_batched(obs_batch, params, meta))
    assert q_batch.shape == (16, len_act)
    assert jnp.allclose(q_batch, ref_fn(obs_batch.reshape(16, -1)), atol=1e-2, rtol=1e-2)

    print("KERNEL_OK")
</pallas_src>

<mosaic_0001>
module attributes {stable_mosaic.version = 11 : i64} {
  func.func @policy_fc_kernel(%arg0: i32, %arg1: memref<8x16xf32, #tpu.memory_space<vmem>>, %arg2: memref<16x128xbf16, #tpu.memory_space<vmem>>, %arg3: memref<1x128xf32, #tpu.memory_space<vmem>>, %arg4: memref<128x4xbf16, #tpu.memory_space<vmem>>, %arg5: memref<1x4xf32, #tpu.memory_space<vmem>>, %arg6: memref<8x4xf32, #tpu.memory_space<vmem>>) attributes {dimension_semantics = [#tpu.dimension_semantics<parallel>], iteration_bounds = array<i64: 1>, scalar_prefetch = 0 : i64, scratch_operands = 0 : i64, tpu.core_type = #tpu.core_type<tc>, window_params = [{transform_indices = @transform_0, window_bounds = array<i64: 8, 16>}, {pipeline_mode = #tpu.pipeline_mode<synchronous>, transform_indices = @transform_1, window_bounds = array<i64: 16, 128>}, {pipeline_mode = #tpu.pipeline_mode<synchronous>, transform_indices = @transform_2, window_bounds = array<i64: 1, 128>}, {pipeline_mode = #tpu.pipeline_mode<synchronous>, transform_indices = @transform_3, window_bounds = array<i64: 128, 4>}, {pipeline_mode = #tpu.pipeline_mode<synchronous>, transform_indices = @transform_4, window_bounds = array<i64: 1, 4>}, {transform_indices = @transform_5, window_bounds = array<i64: 8, 4>}]} {
    %c0 = arith.constant 0 : index
    %c0_0 = arith.constant 0 : index
    %0 = vector.load %arg1[%c0, %c0_0] : memref<8x16xf32, #tpu.memory_space<vmem>>, vector<8x16xf32>
    %1 = arith.truncf %0 : vector<8x16xf32> to vector<8x16xbf16>
    %c0_1 = arith.constant 0 : index
    %c0_2 = arith.constant 0 : index
    %2 = vector.load %arg2[%c0_1, %c0_2] : memref<16x128xbf16, #tpu.memory_space<vmem>>, vector<16x128xbf16>
    %cst = arith.constant dense<0.000000e+00> : vector<8x128xf32>
    %3 = tpu.matmul %1, %2, %cst {dimension_numbers = #tpu.dot_dimension_numbers<[1], [0], [0], [1], [0, 0, 1, 1], [], []>} : vector<8x16xbf16>, vector<16x128xbf16>, vector<8x128xf32> -> vector<8x128xf32>
    %c0_3 = arith.constant 0 : index
    %c0_4 = arith.constant 0 : index
    %4 = vector.load %arg3[%c0_3, %c0_4] : memref<1x128xf32, #tpu.memory_space<vmem>>, vector<1x128xf32>
    %5 = vector.broadcast %4 : vector<1x128xf32> to vector<8x128xf32>
    %6 = arith.addf %3, %5 : vector<8x128xf32>
    %7 = math.tanh %6 : vector<8x128xf32>
    %8 = arith.truncf %7 : vector<8x128xf32> to vector<8x128xbf16>
    %c0_5 = arith.constant 0 : index
    %c0_6 = arith.constant 0 : index
    %9 = vector.load %arg4[%c0_5, %c0_6] : memref<128x4xbf16, #tpu.memory_space<vmem>>, vector<128x4xbf16>
    %cst_7 = arith.constant dense<0.000000e+00> : vector<8x4xf32>
    %10 = tpu.matmul %8, %9, %cst_7 {dimension_numbers = #tpu.dot_dimension_numbers<[1], [0], [0], [1], [0, 0, 1, 1], [], []>} : vector<8x128xbf16>, vector<128x4xbf16>, vector<8x4xf32> -> vector<8x4xf32>
    %c0_8 = arith.constant 0 : index
    %c0_9 = arith.constant 0 : index
    %11 = vector.load %arg5[%c0_8, %c0_9] : memref<1x4xf32, #tpu.memory_space<vmem>>, vector<1x4xf32>
    %12 = vector.broadcast %11 : vector<1x4xf32> to vector<8x4xf32>
    %13 = arith.addf %10, %12 : vector<8x4xf32>
    %c0_10 = arith.constant 0 : index
    %c0_11 = arith.constant 0 : index
    %14 = vector.load %arg6[%c0_10, %c0_11] : memref<8x4xf32, #tpu.memory_space<vmem>>, vector<8x4xf32>
    tpu.vector_store %arg6[%c0_10, %c0_11], %13 {strides = array<i32>} : memref<8x4xf32, #tpu.memory_space<vmem>>, vector<8x4xf32>,
    return
  }
  func.func @transform_0(%arg0: i32) -> (i32, i32) {
    %c0_i32 = arith.constant 0 : i32
    %c0_i32_0 = arith.constant 0 : i32
    return %arg0, %c0_i32 : i32, i32
  }
  func.func @transform_1(%arg0: i32) -> (i32, i32) {
    %c0_i32 = arith.constant 0 : i32
    %c0_i32_0 = arith.constant 0 : i32
    %c0_i32_1 = arith.constant 0 : i32
    return %c0_i32, %c0_i32_0 : i32, i32
  }
  func.func @transform_2(%arg0: i32) -> (i32, i32) {
    %c0_i32 = arith.constant 0 : i32
    %c0_i32_0 = arith.constant 0 : i32
    %c0_i32_1 = arith.constant 0 : i32
    return %c0_i32, %c0_i32_0 : i32, i32
  }
  func.func @transform_3(%arg0: i32) -> (i32, i32) {
    %c0_i32 = arith.constant 0 : i32
    %c0_i32_0 = arith.constant 0 : i32
    %c0_i32_1 = arith.constant 0 : i32
    return %c0_i32, %c0_i32_0 : i32, i32
  }
  func.func @transform_4(%arg0: i32) -> (i32, i32) {
    %c0_i32 = arith.constant 0 : i32
    %c0_i32_0 = arith.constant 0 : i32
    %c0_i32_1 = arith.constant 0 : i32
    return %c0_i32, %c0_i32_0 : i32, i32
  }
  func.func @transform_5(%arg0: i32) -> (i32, i32) {
    %c0_i32 = arith.constant 0 : i32
    %c0_i32_0 = arith.constant 0 : i32
    return %arg0, %c0_i32 : i32, i32
  }
}

</mosaic_0001>

<bundles_post_ra>
// kernel: _policy_fc_batched_impl.1
= control target key start
LH: loop header
LB: loop body
LE: loop exit
PB: predicated region body
PF: predicated region fallthrough
CT: control target
= control target key end

     0   :  { %v263_v0 = vmov 0.0   ;;  %vm264_vm0 = vmmov 0   ;;  %vm38_vm1 = vcmask 130048   ;;  %vm195_vm2 = vcmask 31744   ;;  %s334_s1 = inlined_call_operand.vmem [shape: bf16[16,128], index: 1, kind: input, shape index: {}]   ;;  %s335_s0 = inlined_call_operand.vmem [shape: f32[8,16], index: 0, kind: input, shape index: {}]   ;;  %s336_s3 = inlined_call_operand.vmem [shape: bf16[128,4], index: 3, kind: input, shape index: {}]   ;;  %s337_s2 = inlined_call_operand.vmem [shape: f32[1,128], index: 2, kind: input, shape index: {}]   ;;  %s338_s4 = inlined_call_operand.vmem [shape: f32[1,4], index: 4, kind: input, shape index: {}]   ;;  %s339_s5 = inlined_call_operand.vmem [shape: f32[8,4], index: 5, kind: output, shape index: {}]  }
   0x1   :  { %224 = vmatprep.subr.bf16.mxu0 %v263_v0  ;;  %v252_v1 = vld [vmem:[%s334_s1] sm:$0xff]   ;;  %226 = vmatprep.mubr.msk.bf16.mxu0 %vm264_vm0, %v263_v0  ;;  %v254_v5 = vld [vmem:[%s336_s3 + $0x8] sm:$0xff]   ;;  %v255_v6 = vld [vmem:[%s336_s3 + $0x10] sm:$0xff]  }
   0x2   :  { %v21_v2 = vld [vmem:[%s335_s0] sm:$0xff]  ;;  %230 = vmatprep.subr.bf16.mxu1 %v263_v0  ;;  %246 = vmatprep.mubr.msk.bf16.mxu1 %vm264_vm0, %v263_v0  ;;  %v256_v7 = vld [vmem:[%s336_s3 + $0x18] sm:$0xff]   ;;  %v258_v9 = vld [vmem:[%s336_s3 + $0x28] sm:$0xff]  }
   0x3   :  { %225 = vmatpush3.bf16.msra.mxu0 %v252_v1  ;;  %v22_v3 = vpack.c.bf16 %v21_v2, %v21_v2  ;;  %v253_v4 = vld [vmem:[%s336_s3] sm:$0xff]   ;;  %v259_v10 = vld [vmem:[%s336_s3 + $0x30] sm:$0xff]   ;;  %v260_v11 = vld [vmem:[%s336_s3 + $0x38] sm:$0xff]  }
   0x4   :  { %231 = vmatpush3.bf16.msra.mxu1 %v253_v4  ;;  %v257_v8 = vld [vmem:[%s336_s3 + $0x20] sm:$0xff]  }
   0x5   :  { %232 = vmatprep.subr.bf16.mxu1 %v263_v0  ;;  %v201_v12 = vld [vmem:[%s337_s2] ss:$0 sm:$0xff] }
   0x6   :  { %227 = vmatmul.mubr.msk.bf16.vlgmr.msra.gmra.mrb[0].mxu0 %vm38_vm1, %v22_v3  ;;  %v204_v20 = vld [vmem:[%s338_s4] ss:$0 sm:$0xff] }
   0x8   :  { %233 = vmatpush3.bf16.msra.mxu1 %v254_v5 }
   0x9   :  { %234 = vmatprep.subr.bf16.mxu1 %v263_v0 }
   0xc   :  { %235 = vmatpush3.bf16.msra.mxu1 %v255_v6 }
   0xd   :  { %236 = vmatprep.subr.bf16.mxu1 %v263_v0 }
  0x10   :  { %237 = vmatpush3.bf16.msra.mxu1 %v256_v7 }
  0x11   :  { %238 = vmatprep.subr.bf16.mxu1 %v263_v0 }
  0x14   :  { %239 = vmatpush3.bf16.msra.mxu1 %v257_v8 }
  0x15   :  { %240 = vmatprep.subr.bf16.mxu1 %v263_v0 }
  0x18   :  { %241 = vmatpush3.bf16.msra.mxu1 %v258_v9 }
  0x19   :  { %242 = vmatprep.subr.bf16.mxu1 %v263_v0 }
  0x1c   :  { %243 = vmatpush3.bf16.msra.mxu1 %v259_v10 }
  0x1d   :  { %244 = vmatprep.subr.bf16.mxu1 %v263_v0 }
  0x20   :  { %245 = vmatpush3.bf16.msra.mxu1 %v260_v11 }
  0xd9   :  { %v76_v13 = vpop.f32.mrb[0].mxu0 }
  0xda   :  { %v77_v14 = vadd.f32 %v201_v12, %v76_v13  ;;  %v228_v15 = vpop.f32.mrb[1].mxu0 }
  0xdb   :  { %v79_v16 = vpop.f32.mrb[2].mxu0 }
  0xdc   :  { %261 = vtanh.f32 %v77_v14  ;;  %v229_v17 = vpop.f32.mrb[3].mxu0 }
  0xe6   :  { %v262_v18 = vpop.eup %261 }
  0xe7   :  { %v83_v19 = vpack.c.bf16 %v262_v18, %v262_v18 }
  0xe9   :  { %247 = vmatmul.mubr.bf16.vlgmr.msra.gmra.mrb[0].mxu1 %v83_v19 }
 0x1bc   :  { %v189_v21 = vpop.f32.mrb[0].mxu1 }
 0x1bd   :  { %v190_v22 = vadd.f32 %v204_v20, %v189_v21  ;;  %v248_v23 = vpop.f32.mrb[1].mxu1 }
 0x1be   :  { %v192_v24 = vpop.f32.mrb[2].mxu1 }
 0x1bf   :  { %196 = vst.msk [vmem:[%s339_s5] sm:$0xff] %vm195_vm2, %v190_v22  ;;  %v249_v25 = vpop.f32.mrb[3].mxu1 }

</bundles_post_ra>
